<compile_context>
chip_gen: v7x
topology: tpu7x:2x2x1
jax: 0.10.0
libtpu: 0.0.40
codegen_flags: <defaults>
</compile_context>

<pallas_src>
from functools import partial

import jax
import jax.numpy as jnp
from jax.experimental import pallas as pl
from jax.experimental.pallas import tpu as pltpu


# -----------------------------------------------------------------------------
# Fused kernel: whole recurrence + classifier in a single invocation.
# -----------------------------------------------------------------------------
def hrnn_fused_kernel(x2d_ref, wx_ref, wh_ref, b_ref, wc_ref, bc_ref,
                      out_ref, pred_ref, *, seq_len, batch):
    """Shapes (H = H1 + H0, layer1 occupies the first H1 columns):
       x2d_ref : (T*B, In) bf16   flattened input sequence
       wx_ref  : (In, H)   bf16   fused input weights  [0 | wi0]
       wh_ref  : (H, H)    bf16   fused recurrent wts  [[wr1, wf0], [wi1, wr0]]
       b_ref   : (1, H)    f32    fused bias           [b1 | b0]
       wc_ref  : (H1, O)   bf16   classifier weight
       bc_ref  : (1, O)    f32    classifier bias
       out_ref : (T*B, H1) f32    layer-1 hidden at every step
       pred_ref: (T*B, O)  f32    classifier output at every step
    """
    T, B = seq_len, batch
    H = wh_ref.shape[0]
    H1 = out_ref.shape[1]

    wh = wh_ref[...]                       # hoisted weight/bias loads
    bias = b_ref[...]

    # x-projection for every timestep in one MXU dot (no recurrent dependency).
    xp_all = jnp.dot(x2d_ref[...], wx_ref[...],
                     preferred_element_type=jnp.float32) + bias     # (T*B, H) f32

    # init_hidden: packed previous-step state [h1 | h0], carried in vregs.
    h = jnp.zeros((B, H), jnp.float32)

    # T is small & static -> fully unrolled loop; only the h@wh dot is on the
    # serial critical path (one bf16 MXU push per step).
    # TODO(synk): for long sequences switch to lax.fori_loop carrying `h`; on
    # v5e/v6e consider pltpu.matmul_push_rhs(wh) once + matmul_acc_lhs/pop per
    # step to keep the recurrent weights resident in the MXU staging regs.
    for t in range(T):
        pre = xp_all[t * B:(t + 1) * B, :] + jnp.dot(
            h.astype(jnp.bfloat16), wh, preferred_element_type=jnp.float32)
        h = jnp.tanh(pre)                  # [h1_new | h0_new], synchronous update
        out_ref[t * B:(t + 1) * B, :] = h[:, :H1]   # lane-prefix slice: free

    # Classifier fused in: one (T*B,H1)@(H1,O) dot on the VMEM-resident hiddens,
    # single store of the whole pred block.
    h_all = out_ref[...]                                            # (T*B, H1) f32
    pred_ref[...] = jnp.dot(h_all.astype(jnp.bfloat16), wc_ref[...],
                            preferred_element_type=jnp.float32) + bc_ref[...]


# -----------------------------------------------------------------------------
# Wrapper
# -----------------------------------------------------------------------------
@jax.jit
def sequential_hrnn_forward(x, params):
    """x: (T, B, In) float32.  Returns (pred (T,B,O), output (T,B,H1))."""
    wi0, wf0, wr0, b0, wi1, wr1, b1, wc, bc = params
    T, B, In = x.shape
    H0 = wr0.shape[0]
    H1 = wr1.shape[0]
    O = wc.shape[1]
    H = H0 + H1

    # --- fuse the per-step weights (one-time, wrapper-side).  Layer1 occupies
    #     the FIRST H1 columns so the per-step output slice is a lane-prefix.
    # columns [0:H1] -> layer1 pre-act : h0@wi1 + h1@wr1 + b1
    # columns [H1: ] -> layer0 pre-act : x@wi0 + h1@wf0 + h0@wr0 + b0
    cdt = jnp.bfloat16
    wx_all = jnp.concatenate(
        [jnp.zeros((In, H1), x.dtype), wi0], axis=1).astype(cdt)     # (In, H)
    wh_all = jnp.concatenate(
        [jnp.concatenate([wr1, wf0], axis=1),    # rows for h1
         jnp.concatenate([wi1, wr0], axis=1)],   # rows for h0
        axis=0).astype(cdt)                       # (H, H)
    b_all = jnp.concatenate([b1, b0], axis=1)     # (1, H) f32
    x2d = x.reshape(T * B, In).astype(cdt)
    wc_b = wc.astype(cdt)

    full = lambda shape: pl.BlockSpec(shape, lambda i: (0,) * len(shape))

    out2d, pred2d = pl.pallas_call(
        partial(hrnn_fused_kernel, seq_len=T, batch=B),
        out_shape=(jax.ShapeDtypeStruct((T * B, H1), jnp.float32),
                   jax.ShapeDtypeStruct((T * B, O), jnp.float32)),
        grid_spec=pltpu.PrefetchScalarGridSpec(
            num_scalar_prefetch=0,
            grid=(1,),
            in_specs=[
                full((T * B, In)),
                full((In, H)),
                full((H, H)),
                full((1, H)),
                full((H1, O)),
                full((1, O)),
            ],
            out_specs=[full((T * B, H1)), full((T * B, O))],
        ),
        compiler_params=pltpu.CompilerParams(
            dimension_semantics=("arbitrary",),
        ),
    )(x2d, wx_all, wh_all, b_all, wc_b, bc)

    # Free row-major bitcasts back to the module's (T, B, ...) shapes.
    output = out2d.reshape(T, B, H1)
    pred = pred2d.reshape(T, B, O)
    return pred, output


# -----------------------------------------------------------------------------
# Pure-JAX reference (original, unfused f32 math) for validation.
# -----------------------------------------------------------------------------
def reference_forward(x, params):
    wi0, wf0, wr0, b0, wi1, wr1, b1, wc, bc = params
    T, B, _ = x.shape
    H0 = wr0.shape[0]
    H1 = wr1.shape[0]

    def step(carry, x_t):
        h0, h1 = carry
        h0_new = jnp.tanh(x_t @ wi0 + h1 @ wf0 + h0 @ wr0 + b0)
        h1_new = jnp.tanh(h0 @ wi1 + h1 @ wr1 + b1)
        return (h0_new, h1_new), h1_new

    init = (jnp.zeros((B, H0), jnp.float32), jnp.zeros((B, H1), jnp.float32))
    _, output = jax.lax.scan(step, init, x)
    pred = output @ wc + bc
    return pred, output


if __name__ == "__main__":
    # Small shapes consistent with the module's forward:
    #   x: (seq=8, batch=4, input_size=16); two layers H0=H1=32; output_size=8
    T, B, In, H0, H1, O = 8, 4, 16, 32, 32, 8

    key = jax.random.PRNGKey(0)
    keys = jax.random.split(key, 10)

    x = jax.random.normal(keys[0], (T, B, In), jnp.float32)

    s = 0.1  # deterministic small-scale init (keeps the recurrence contractive)
    wi0 = s * jax.random.normal(keys[1], (In, H0), jnp.float32)
    wf0 = s * jax.random.normal(keys[2], (H1, H0), jnp.float32)
    wr0 = s * jax.random.normal(keys[3], (H0, H0), jnp.float32)
    b0 = s * jax.random.normal(keys[4], (1, H0), jnp.float32)
    wi1 = s * jax.random.normal(keys[5], (H0, H1), jnp.float32)
    wr1 = s * jax.random.normal(keys[6], (H1, H1), jnp.float32)
    b1 = s * jax.random.normal(keys[7], (1, H1), jnp.float32)
    wc = s * jax.random.normal(keys[8], (H1, O), jnp.float32)
    bc = s * jax.random.normal(keys[9], (1, O), jnp.float32)

    params = (wi0, wf0, wr0, b0, wi1, wr1, b1, wc, bc)

    pred, output = sequential_hrnn_forward(x, params)
    pred = jax.block_until_ready(pred)
    output = jax.block_until_ready(output)

    pred_ref, output_ref = reference_forward(x, params)
    assert pred.shape == (T, B, O) and output.shape == (T, B, H1)
    # Tolerance accounts for bf16 MXU operands vs the f32 reference.
    assert jnp.allclose(output, output_ref, atol=2e-2, rtol=2e-2)
    assert jnp.allclose(pred, pred_ref, atol=2e-2, rtol=2e-2)

    print("KERNEL_OK")
</pallas_src>

<mosaic_0001>
module attributes {stable_mosaic.version = 11 : i64} {
  func.func @hrnn_fused_kernel(%arg0: i32, %arg1: memref<32x16xbf16, #tpu.memory_space<vmem>>, %arg2: memref<16x64xbf16, #tpu.memory_space<vmem>>, %arg3: memref<64x64xbf16, #tpu.memory_space<vmem>>, %arg4: memref<1x64xf32, #tpu.memory_space<vmem>>, %arg5: memref<32x8xbf16, #tpu.memory_space<vmem>>, %arg6: memref<1x8xf32, #tpu.memory_space<vmem>>, %arg7: memref<32x32xf32, #tpu.memory_space<vmem>>, %arg8: memref<32x8xf32, #tpu.memory_space<vmem>>) attributes {dimension_semantics = [#tpu.dimension_semantics<arbitrary>], iteration_bounds = array<i64: 1>, scalar_prefetch = 0 : i64, scratch_operands = 0 : i64, tpu.core_type = #tpu.core_type<tc>, window_params = [{pipeline_mode = #tpu.pipeline_mode<synchronous>, transform_indices = @transform_0, window_bounds = array<i64: 32, 16>}, {pipeline_mode = #tpu.pipeline_mode<synchronous>, transform_indices = @transform_1, window_bounds = array<i64: 16, 64>}, {pipeline_mode = #tpu.pipeline_mode<synchronous>, transform_indices = @transform_2, window_bounds = array<i64: 64, 64>}, {pipeline_mode = #tpu.pipeline_mode<synchronous>, transform_indices = @transform_3, window_bounds = array<i64: 1, 64>}, {pipeline_mode = #tpu.pipeline_mode<synchronous>, transform_indices = @transform_4, window_bounds = array<i64: 32, 8>}, {pipeline_mode = #tpu.pipeline_mode<synchronous>, transform_indices = @transform_5, window_bounds = array<i64: 1, 8>}, {pipeline_mode = #tpu.pipeline_mode<synchronous>, transform_indices = @transform_6, window_bounds = array<i64: 32, 32>}, {pipeline_mode = #tpu.pipeline_mode<synchronous>, transform_indices = @transform_7, window_bounds = array<i64: 32, 8>}]} {
    %c0 = arith.constant 0 : index
    %c0_0 = arith.constant 0 : index
    %0 = vector.load %arg3[%c0, %c0_0] : memref<64x64xbf16, #tpu.memory_space<vmem>>, vector<64x64xbf16>
    %c0_1 = arith.constant 0 : index
    %c0_2 = arith.constant 0 : index
    %1 = vector.load %arg4[%c0_1, %c0_2] : memref<1x64xf32, #tpu.memory_space<vmem>>, vector<1x64xf32>
    %c0_3 = arith.constant 0 : index
    %c0_4 = arith.constant 0 : index
    %2 = vector.load %arg1[%c0_3, %c0_4] : memref<32x16xbf16, #tpu.memory_space<vmem>>, vector<32x16xbf16>
    %c0_5 = arith.constant 0 : index
    %c0_6 = arith.constant 0 : index
    %3 = vector.load %arg2[%c0_5, %c0_6] : memref<16x64xbf16, #tpu.memory_space<vmem>>, vector<16x64xbf16>
    %cst = arith.constant dense<0.000000e+00> : vector<32x64xf32>
    %4 = tpu.matmul %2, %3, %cst {dimension_numbers = #tpu.dot_dimension_numbers<[1], [0], [0], [1], [0, 0, 1, 1], [], []>} : vector<32x16xbf16>, vector<16x64xbf16>, vector<32x64xf32> -> vector<32x64xf32>
    %5 = vector.broadcast %1 : vector<1x64xf32> to vector<32x64xf32>
    %6 = arith.addf %4, %5 : vector<32x64xf32>
    %cst_7 = arith.constant 0.000000e+00 : f32
    %7 = vector.broadcast %cst_7 : f32 to vector<4x64xf32>
    %8 = vector.extract_strided_slice %6 {offsets = [0, 0], sizes = [4, 64], strides = [1, 1]} : vector<32x64xf32> to vector<4x64xf32>
    %9 = arith.truncf %7 : vector<4x64xf32> to vector<4x64xbf16>
    %cst_8 = arith.constant dense<0.000000e+00> : vector<4x64xf32>
    %10 = tpu.matmul %9, %0, %cst_8 {dimension_numbers = #tpu.dot_dimension_numbers<[1], [0], [0], [1], [0, 0, 1, 1], [], []>} : vector<4x64xbf16>, vector<64x64xbf16>, vector<4x64xf32> -> vector<4x64xf32>
    %11 = arith.addf %8, %10 : vector<4x64xf32>
    %12 = math.tanh %11 : vector<4x64xf32>
    %13 = vector.extract_strided_slice %12 {offsets = [0, 0], sizes = [4, 32], strides = [1, 1]} : vector<4x64xf32> to vector<4x32xf32>
    %c0_9 = arith.constant 0 : index
    %c0_10 = arith.constant 0 : index
    %14 = vector.load %arg7[%c0_9, %c0_10] : memref<32x32xf32, #tpu.memory_space<vmem>>, vector<4x32xf32>
    tpu.vector_store %arg7[%c0_9, %c0_10], %13 {strides = array<i32>} : memref<32x32xf32, #tpu.memory_space<vmem>>, vector<4x32xf32>,
    %15 = vector.extract_strided_slice %6 {offsets = [4, 0], sizes = [4, 64], strides = [1, 1]} : vector<32x64xf32> to vector<4x64xf32>
    %16 = arith.truncf %12 : vector<4x64xf32> to vector<4x64xbf16>
    %cst_11 = arith.constant dense<0.000000e+00> : vector<4x64xf32>
    %17 = tpu.matmul %16, %0, %cst_11 {dimension_numbers = #tpu.dot_dimension_numbers<[1], [0], [0], [1], [0, 0, 1, 1], [], []>} : vector<4x64xbf16>, vector<64x64xbf16>, vector<4x64xf32> -> vector<4x64xf32>
    %18 = arith.addf %15, %17 : vector<4x64xf32>
    %19 = math.tanh %18 : vector<4x64xf32>
    %20 = vector.extract_strided_slice %19 {offsets = [0, 0], sizes = [4, 32], strides = [1, 1]} : vector<4x64xf32> to vector<4x32xf32>
    %c4 = arith.constant 4 : index
    %c0_12 = arith.constant 0 : index
    %21 = vector.load %arg7[%c4, %c0_12] : memref<32x32xf32, #tpu.memory_space<vmem>>, vector<4x32xf32>
    tpu.vector_store %arg7[%c4, %c0_12], %20 {strides = array<i32>} : memref<32x32xf32, #tpu.memory_space<vmem>>, vector<4x32xf32>,
    %22 = vector.extract_strided_slice %6 {offsets = [8, 0], sizes = [4, 64], strides = [1, 1]} : vector<32x64xf32> to vector<4x64xf32>
    %23 = arith.truncf %19 : vector<4x64xf32> to vector<4x64xbf16>
    %cst_13 = arith.constant dense<0.000000e+00> : vector<4x64xf32>
    %24 = tpu.matmul %23, %0, %cst_13 {dimension_numbers = #tpu.dot_dimension_numbers<[1], [0], [0], [1], [0, 0, 1, 1], [], []>} : vector<4x64xbf16>, vector<64x64xbf16>, vector<4x64xf32> -> vector<4x64xf32>
    %25 = arith.addf %22, %24 : vector<4x64xf32>
    %26 = math.tanh %25 : vector<4x64xf32>
    %27 = vector.extract_strided_slice %26 {offsets = [0, 0], sizes = [4, 32], strides = [1, 1]} : vector<4x64xf32> to vector<4x32xf32>
    %c8 = arith.constant 8 : index
    %c0_14 = arith.constant 0 : index
    %28 = vector.load %arg7[%c8, %c0_14] : memref<32x32xf32, #tpu.memory_space<vmem>>, vector<4x32xf32>
    tpu.vector_store %arg7[%c8, %c0_14], %27 {strides = array<i32>} : memref<32x32xf32, #tpu.memory_space<vmem>>, vector<4x32xf32>,
    %29 = vector.extract_strided_slice %6 {offsets = [12, 0], sizes = [4, 64], strides = [1, 1]} : vector<32x64xf32> to vector<4x64xf32>
    %30 = arith.truncf %26 : vector<4x64xf32> to vector<4x64xbf16>
    %cst_15 = arith.constant dense<0.000000e+00> : vector<4x64xf32>
    %31 = tpu.matmul %30, %0, %cst_15 {dimension_numbers = #tpu.dot_dimension_numbers<[1], [0], [0], [1], [0, 0, 1, 1], [], []>} : vector<4x64xbf16>, vector<64x64xbf16>, vector<4x64xf32> -> vector<4x64xf32>
    %32 = arith.addf %29, %31 : vector<4x64xf32>
    %33 = math.tanh %32 : vector<4x64xf32>
    %34 = vector.extract_strided_slice %33 {offsets = [0, 0], sizes = [4, 32], strides = [1, 1]} : vector<4x64xf32> to vector<4x32xf32>
    %c12 = arith.constant 12 : index
    %c0_16 = arith.constant 0 : index
    %35 = vector.load %arg7[%c12, %c0_16] : memref<32x32xf32, #tpu.memory_space<vmem>>, vector<4x32xf32>
    tpu.vector_store %arg7[%c12, %c0_16], %34 {strides = array<i32>} : memref<32x32xf32, #tpu.memory_space<vmem>>, vector<4x32xf32>,
    %36 = vector.extract_strided_slice %6 {offsets = [16, 0], sizes = [4, 64], strides = [1, 1]} : vector<32x64xf32> to vector<4x64xf32>
    %37 = arith.truncf %33 : vector<4x64xf32> to vector<4x64xbf16>
    %cst_17 = arith.constant dense<0.000000e+00> : vector<4x64xf32>
    %38 = tpu.matmul %37, %0, %cst_17 {dimension_numbers = #tpu.dot_dimension_numbers<[1], [0], [0], [1], [0, 0, 1, 1], [], []>} : vector<4x64xbf16>, vector<64x64xbf16>, vector<4x64xf32> -> vector<4x64xf32>
    %39 = arith.addf %36, %38 : vector<4x64xf32>
    %40 = math.tanh %39 : vector<4x64xf32>
    %41 = vector.extract_strided_slice %40 {offsets = [0, 0], sizes = [4, 32], strides = [1, 1]} : vector<4x64xf32> to vector<4x32xf32>
    %c16 = arith.constant 16 : index
    %c0_18 = arith.constant 0 : index
    %42 = vector.load %arg7[%c16, %c0_18] : memref<32x32xf32, #tpu.memory_space<vmem>>, vector<4x32xf32>
    tpu.vector_store %arg7[%c16, %c0_18], %41 {strides = array<i32>} : memref<32x32xf32, #tpu.memory_space<vmem>>, vector<4x32xf32>,
    %43 = vector.extract_strided_slice %6 {offsets = [20, 0], sizes = [4, 64], strides = [1, 1]} : vector<32x64xf32> to vector<4x64xf32>
    %44 = arith.truncf %40 : vector<4x64xf32> to vector<4x64xbf16>
    %cst_19 = arith.constant dense<0.000000e+00> : vector<4x64xf32>
    %45 = tpu.matmul %44, %0, %cst_19 {dimension_numbers = #tpu.dot_dimension_numbers<[1], [0], [0], [1], [0, 0, 1, 1], [], []>} : vector<4x64xbf16>, vector<64x64xbf16>, vector<4x64xf32> -> vector<4x64xf32>
    %46 = arith.addf %43, %45 : vector<4x64xf32>
    %47 = math.tanh %46 : vector<4x64xf32>
    %48 = vector.extract_strided_slice %47 {offsets = [0, 0], sizes = [4, 32], strides = [1, 1]} : vector<4x64xf32> to vector<4x32xf32>
    %c20 = arith.constant 20 : index
    %c0_20 = arith.constant 0 : index
    %49 = vector.load %arg7[%c20, %c0_20] : memref<32x32xf32, #tpu.memory_space<vmem>>, vector<4x32xf32>
    tpu.vector_store %arg7[%c20, %c0_20], %48 {strides = array<i32>} : memref<32x32xf32, #tpu.memory_space<vmem>>, vector<4x32xf32>,
    %50 = vector.extract_strided_slice %6 {offsets = [24, 0], sizes = [4, 64], strides = [1, 1]} : vector<32x64xf32> to vector<4x64xf32>
    %51 = arith.truncf %47 : vector<4x64xf32> to vector<4x64xbf16>
    %cst_21 = arith.constant dense<0.000000e+00> : vector<4x64xf32>
    %52 = tpu.matmul %51, %0, %cst_21 {dimension_numbers = #tpu.dot_dimension_numbers<[1], [0], [0], [1], [0, 0, 1, 1], [], []>} : vector<4x64xbf16>, vector<64x64xbf16>, vector<4x64xf32> -> vector<4x64xf32>
    %53 = arith.addf %50, %52 : vector<4x64xf32>
    %54 = math.tanh %53 : vector<4x64xf32>
    %55 = vector.extract_strided_slice %54 {offsets = [0, 0], sizes = [4, 32], strides = [1, 1]} : vector<4x64xf32> to vector<4x32xf32>
    %c24 = arith.constant 24 : index
    %c0_22 = arith.constant 0 : index
    %56 = vector.load %arg7[%c24, %c0_22] : memref<32x32xf32, #tpu.memory_space<vmem>>, vector<4x32xf32>
    tpu.vector_store %arg7[%c24, %c0_22], %55 {strides = array<i32>} : memref<32x32xf32, #tpu.memory_space<vmem>>, vector<4x32xf32>,
    %57 = vector.extract_strided_slice %6 {offsets = [28, 0], sizes = [4, 64], strides = [1, 1]} : vector<32x64xf32> to vector<4x64xf32>
    %58 = arith.truncf %54 : vector<4x64xf32> to vector<4x64xbf16>
    %cst_23 = arith.constant dense<0.000000e+00> : vector<4x64xf32>
    %59 = tpu.matmul %58, %0, %cst_23 {dimension_numbers = #tpu.dot_dimension_numbers<[1], [0], [0], [1], [0, 0, 1, 1], [], []>} : vector<4x64xbf16>, vector<64x64xbf16>, vector<4x64xf32> -> vector<4x64xf32>
    %60 = arith.addf %57, %59 : vector<4x64xf32>
    %61 = math.tanh %60 : vector<4x64xf32>
    %62 = vector.extract_strided_slice %61 {offsets = [0, 0], sizes = [4, 32], strides = [1, 1]} : vector<4x64xf32> to vector<4x32xf32>
    %c28 = arith.constant 28 : index
    %c0_24 = arith.constant 0 : index
    %63 = vector.load %arg7[%c28, %c0_24] : memref<32x32xf32, #tpu.memory_space<vmem>>, vector<4x32xf32>
    tpu.vector_store %arg7[%c28, %c0_24], %62 {strides = array<i32>} : memref<32x32xf32, #tpu.memory_space<vmem>>, vector<4x32xf32>,
    %c0_25 = arith.constant 0 : index
    %c0_26 = arith.constant 0 : index
    %64 = vector.load %arg7[%c0_25, %c0_26] : memref<32x32xf32, #tpu.memory_space<vmem>>, vector<32x32xf32>
    %65 = arith.truncf %64 : vector<32x32xf32> to vector<32x32xbf16>
    %c0_27 = arith.constant 0 : index
    %c0_28 = arith.constant 0 : index
    %66 = vector.load %arg5[%c0_27, %c0_28] : memref<32x8xbf16, #tpu.memory_space<vmem>>, vector<32x8xbf16>
    %cst_29 = arith.constant dense<0.000000e+00> : vector<32x8xf32>
    %67 = tpu.matmul %65, %66, %cst_29 {dimension_numbers = #tpu.dot_dimension_numbers<[1], [0], [0], [1], [0, 0, 1, 1], [], []>} : vector<32x32xbf16>, vector<32x8xbf16>, vector<32x8xf32> -> vector<32x8xf32>
    %c0_30 = arith.constant 0 : index
    %c0_31 = arith.constant 0 : index
    %68 = vector.load %arg6[%c0_30, %c0_31] : memref<1x8xf32, #tpu.memory_space<vmem>>, vector<1x8xf32>
    %69 = vector.broadcast %68 : vector<1x8xf32> to vector<32x8xf32>
    %70 = arith.addf %67, %69 : vector<32x8xf32>
    %c0_32 = arith.constant 0 : index
    %c0_33 = arith.constant 0 : index
    %71 = vector.load %arg8[%c0_32, %c0_33] : memref<32x8xf32, #tpu.memory_space<vmem>>, vector<32x8xf32>
    tpu.vector_store %arg8[%c0_32, %c0_33], %70 {strides = array<i32>} : memref<32x8xf32, #tpu.memory_space<vmem>>, vector<32x8xf32>,
    return
  }
  func.func @transform_0(%arg0: i32) -> (i32, i32) {
    %c0_i32 = arith.constant 0 : i32
    %c0_i32_0 = arith.constant 0 : i32
    %c0_i32_1 = arith.constant 0 : i32
    return %c0_i32, %c0_i32_0 : i32, i32
  }
  func.func @transform_1(%arg0: i32) -> (i32, i32) {
    %c0_i32 = arith.constant 0 : i32
    %c0_i32_0 = arith.constant 0 : i32
    %c0_i32_1 = arith.constant 0 : i32
    return %c0_i32, %c0_i32_0 : i32, i32
  }
  func.func @transform_2(%arg0: i32) -> (i32, i32) {
    %c0_i32 = arith.constant 0 : i32
    %c0_i32_0 = arith.constant 0 : i32
    %c0_i32_1 = arith.constant 0 : i32
    return %c0_i32, %c0_i32_0 : i32, i32
  }
  func.func @transform_3(%arg0: i32) -> (i32, i32) {
    %c0_i32 = arith.constant 0 : i32
    %c0_i32_0 = arith.constant 0 : i32
    %c0_i32_1 = arith.constant 0 : i32
    return %c0_i32, %c0_i32_0 : i32, i32
  }
  func.func @transform_4(%arg0: i32) -> (i32, i32) {
    %c0_i32 = arith.constant 0 : i32
    %c0_i32_0 = arith.constant 0 : i32
    %c0_i32_1 = arith.constant 0 : i32
    return %c0_i32, %c0_i32_0 : i32, i32
  }
  func.func @transform_5(%arg0: i32) -> (i32, i32) {
    %c0_i32 = arith.constant 0 : i32
    %c0_i32_0 = arith.constant 0 : i32
    %c0_i32_1 = arith.constant 0 : i32
    return %c0_i32, %c0_i32_0 : i32, i32
  }
  func.func @transform_6(%arg0: i32) -> (i32, i32) {
    %c0_i32 = arith.constant 0 : i32
    %c0_i32_0 = arith.constant 0 : i32
    %c0_i32_1 = arith.constant 0 : i32
    return %c0_i32, %c0_i32_0 : i32, i32
  }
  func.func @transform_7(%arg0: i32) -> (i32, i32) {
    %c0_i32 = arith.constant 0 : i32
    %c0_i32_0 = arith.constant 0 : i32
    %c0_i32_1 = arith.constant 0 : i32
    return %c0_i32, %c0_i32_0 : i32, i32
  }
}

</mosaic_0001>

<bundles_post_ra>
// kernel: sequential_hrnn_forward.1
= control target key start
LH: loop header
LB: loop body
LE: loop exit
PB: predicated region body
PF: predicated region fallthrough
CT: control target
= control target key end

     0   :  { %13 = vsyncpa [#allocation3], 0  ;;  %v922_v1 = vmov 0.0   ;;  %vm65_vm0 = vcmask 130048   ;;  %vm923_vm1 = vmmov 0   ;;  %s1149_s0 = inlined_call_operand.vmem [shape: bf16[32,16], index: 0, kind: input, shape index: {}]   ;;  %s1150_s1 = inlined_call_operand.vmem [shape: bf16[16,64], index: 1, kind: input, shape index: {}]   ;;  %s1151_s2 = inlined_call_operand.vmem [shape: bf16[64,64], index: 2, kind: input, shape index: {}]   ;;  %s1152_s3 = inlined_call_operand.vmem [shape: f32[1,64], index: 3, kind: input, shape index: {}]   ;;  %s1153_s4 = inlined_call_operand.vmem [shape: bf16[32,8], index: 4, kind: input, shape index: {}]   ;;  %s1154_s5 = inlined_call_operand.vmem [shape: f32[1,8], index: 5, kind: input, shape index: {}]   ;;  %s1155_s6 = inlined_call_operand.hbm [shape: f32[32,32], index: 6, kind: output, shape index: {0}]   ;;  %s1156_s7 = inlined_call_operand.hbm [shape: f32[32,8], index: 7, kind: output, shape index: {1}]  }
   0x1   :  { %v972_v0 = vld [vmem:[%s1151_s2] sm:$0xff]   ;;  %738 = vmatprep.subr.bf16.mxu1 %v922_v1  ;;  %v978_v2 = vld [vmem:[%s1151_s2 + $0x8] sm:$0xff]   ;;  %746 = vmatprep.mubr.msk.bf16.mxu1 %vm923_vm1, %v922_v1  ;;  %v997_v6 = vld [vmem:[%s1151_s2 + $0x10] sm:$0xff]  }
   0x2   :  { %739 = vmatpush3.bf16.msra.mxu1 %v972_v0  ;;  %v851_v3 = vld [vmem:[%s1150_s1] sm:$0xff]   ;;  %v854_v5 = vld [vmem:[%s1149_s0 + $0x8] sm:$0xff]  }
   0x3   :  { %740 = vmatprep.subr.bf16.mxu1 %v922_v1  ;;  %v852_v4 = vld [vmem:[%s1149_s0] sm:$0xff]   ;;  %732 = vmatprep.subr.bf16.mxu0 %v851_v3 }
   0x4   :  { %733 = vmatpush3.bf16.msra.mxu0 %v851_v3  ;;  %734 = vmatprep.mubr.msk.bf16.mxu0 %vm65_vm0, %v852_v4 }
   0x5   :  { %750 = vmatprep.subr.bf16.mxu0 %v922_v1 }
   0x6   :  { %741 = vmatpush3.bf16.msra.mxu1 %v978_v2 }
   0x7   :  { %742 = vmatprep.subr.bf16.mxu1 %v922_v1  ;;  %735 = vmatmul.mubr.msk.bf16.vlgmr.msra.gmra.mrb[0].mxu0 %vm65_vm0, %v854_v5 }
   0x8   :  { %14 = vsyncpa [#allocation5], 0  ;;  %751 = vmatpush3.bf16.msra.mxu0 %v972_v0  ;;  %758 = vmatprep.mubr.msk.bf16.mxu0 %vm923_vm1, %v922_v1  ;;  %v1008_v7 = vld [vmem:[%s1151_s2 + $0x18] sm:$0xff]   ;;  %v924_v8 = vmov 0   ;;  %v663_v9 = vld [vmem:[%s1152_s3] ss:$0 sm:$0xff] }
   0x9   :  { %752 = vmatprep.subr.bf16.mxu0 %v922_v1  ;;  %vm191_vm2 = vcmask 257024   ;;  %vm145_vm3 = vcmask 523264   ;;  %vm242_vm4 = vcmask 261124   ;;  %vm570_vm5 = vcmask 261120  }
   0xa   :  { %743 = vmatpush3.bf16.msra.mxu1 %v997_v6 }
   0xb   :  { %744 = vmatprep.subr.bf16.mxu1 %v922_v1 }
   0xc   :  { %753 = vmatpush3.bf16.msra.mxu0 %v978_v2 }
   0xd   :  { %754 = vmatprep.subr.bf16.mxu0 %v922_v1 }
   0xe   :  { %745 = vmatpush3.bf16.msra.mxu1 %v1008_v7 }
   0xf   :  { %762 = vmatprep.subr.bf16.mxu1 %v922_v1 }
  0x10   :  { %755 = vmatpush3.bf16.msra.mxu0 %v997_v6 }
  0x11   :  { %747 = vmatmul.mubr.bf16.vlgmr.msra.gmra.mrb[0].mxu1 %v924_v8  ;;  %756 = vmatprep.subr.bf16.mxu0 %v922_v1 }
  0x12   :  { %763 = vmatpush3.bf16.msra.mxu1 %v972_v0  ;;  %770 = vmatprep.mubr.msk.bf16.mxu1 %vm923_vm1, %v922_v1 }
  0x13   :  { %764 = vmatprep.subr.bf16.mxu1 %v922_v1 }
  0x14   :  { %757 = vmatpush3.bf16.msra.mxu0 %v1008_v7 }
  0x15   :  { %774 = vmatprep.subr.bf16.mxu0 %v922_v1 }
  0x16   :  { %765 = vmatpush3.bf16.msra.mxu1 %v978_v2 }
  0x17   :  { %766 = vmatprep.subr.bf16.mxu1 %v922_v1 }
  0x1a   :  { %767 = vmatpush3.bf16.msra.mxu1 %v997_v6 }
  0x1b   :  { %768 = vmatprep.subr.bf16.mxu1 %v922_v1 }
  0x1e   :  { %769 = vmatpush3.bf16.msra.mxu1 %v1008_v7 }
  0x1f   :  { %786 = vmatprep.subr.bf16.mxu1 %v922_v1 }
  0xda   :  { %v736_v10 = vpop.f32.mrb[0].mxu0 }
  0xdb   :  { %v1033_v11 = vadd.f32 %v736_v10, %v663_v9  ;;  %v106_v12 = vpop.f32.mrb[1].mxu0 }
  0xdc   :  { %v737_v13 = vpop.f32.mrb[2].mxu0  ;;  %v107_v17 = vadd.f32 %v663_v9, %v106_v12  ;;  %v856_v12 = vld [vmem:[%s1153_s4] sm:$0xff]  }
  0xdd   :  { %v1035_v14 = vadd.f32 %v737_v13, %v663_v9  ;;  %v109_v15 = vpop.f32.mrb[3].mxu0  ;;  %v857_v13 = vld [vmem:[%s1153_s4 + $0x8] sm:$0xff]   ;;  %s925_s4 = smov [#allocation2]  }
  0xde   :  { %v1037_v16 = vadd.f32 %v663_v9, %v109_v15  ;;  %s636_s17 = sshll.u32 %s925_s4, 4  ;;  %s637_s17 = int_to_ptr.vmem [resolvable:$true] %s636_s17 }
  0xdf   :  { %s874_s18 = scalar_lea.vmem %s637_s17, 512  ;;  %p879_p1 = scmp.lt.s32.totalorder %s637_s17, %s637_s17 }
  0xe0   :  { %p875_p0 = scmp.ne.s32.totalorder %s637_s17, %s874_s18  ;;  %p880_p2 = scmp.lt.s32.totalorder %s874_s18, %s874_s18 }
  0xe2   :  { %p881_p3 = por %p880_p2, %p879_p1 }
  0xe4   :  { %v183_v18 = vpop.f32.mrb[0].mxu1  ;;  %p882_p4 = pnand %p881_p3, %p875_p0 }
  0xe5   :  { %v189_v19 = vadd.f32 %v183_v18, %v107_v17  ;;  %v748_v20 = vpop.f32.mrb[1].mxu1 }
  0xe6   :  { %v186_v21 = vpop.f32.mrb[2].mxu1 }
  0xe7   :  { %858 = vtanh.f32 %v189_v19  ;;  %v749_v22 = vpop.f32.mrb[3].mxu1 }
  0xf1   :  { %v859_v23 = vpop.eup %858 }
  0xf2   :  { %192 = vst.msk [vmem:[#allocation2] sm:$0xf] %vm191_vm2, %v859_v23  ;;  %v193_v24 = vpack.c.bf16 %v859_v23, %v859_v23 }
  0xf4   :  { %759 = vmatmul.mubr.msk.bf16.vlgmr.msra.gmra.mrb[4].mxu0 %vm145_vm3, %v193_v24 }
  0xf5   :  { %775 = vmatpush3.bf16.msra.mxu0 %v972_v0  ;;  %782 = vmatprep.mubr.msk.bf16.mxu0 %vm923_vm1, %v922_v1 }
  0xf6   :  { %776 = vmatprep.subr.bf16.mxu0 %v922_v1 }
  0xf9   :  { %777 = vmatpush3.bf16.msra.mxu0 %v978_v2 }
  0xfa   :  { %778 = vmatprep.subr.bf16.mxu0 %v922_v1 }
  0xfd   :  { %779 = vmatpush3.bf16.msra.mxu0 %v997_v6 }
  0xfe   :  { %780 = vmatprep.subr.bf16.mxu0 %v922_v1 }
 0x101   :  { %781 = vmatpush3.bf16.msra.mxu0 %v1008_v7 }
 0x102   :  { %798 = vmatprep.subr.bf16.mxu0 %v922_v1 }
 0x1c7   :  { %v231_v25 = vpop.f32.mrb[4].mxu0 }
 0x1c8   :  { %v238_v26 = vrot.slane %v231_v25, 4  ;;  %v760_v27 = vpop.f32.mrb[5].mxu0 }
 0x1c9   :  { %v234_v28 = vpop.f32.mrb[6].mxu0 }
 0x1ca   :  { %v240_v29 = vadd.f32 %v238_v26, %v107_v17  ;;  %v761_v30 = vpop.f32.mrb[7].mxu0 }
 0x1cc   :  { %860 = vtanh.f32 %v240_v29 }
 0x1d6   :  { %v861_v31 = vpop.eup %860 }
 0x1d7   :  { %243 = vst.msk [vmem:[#allocation2] sm:$0xf0] %vm242_vm4, %v861_v31  ;;  %v244_v32 = vpack.c.bf16 %v861_v31, %v861_v31 }
 0x1d9   :  { %v246_v33 = vrot.slane %v244_v32, 2 }
 0x1db   :  { %771 = vmatmul.mubr.msk.bf16.vlgmr.msra.gmra.mrb[4].mxu1 %vm145_vm3, %v246_v33 }
 0x1dc   :  { %787 = vmatpush3.bf16.msra.mxu1 %v972_v0  ;;  %794 = vmatprep.mubr.msk.bf16.mxu1 %vm923_vm1, %v922_v1 }
 0x1dd   :  { %788 = vmatprep.subr.bf16.mxu1 %v922_v1 }
 0x1de   :  { %v541_v4 = vld [vmem:[#allocation2] sm:$0xff] }
 0x1e0   :  { %789 = vmatpush3.bf16.msra.mxu1 %v978_v2 }
 0x1e1   :  { %790 = vmatprep.subr.bf16.mxu1 %v922_v1 }
 0x1e4   :  { %791 = vmatpush3.bf16.msra.mxu1 %v997_v6 }
 0x1e5   :  { %792 = vmatprep.subr.bf16.mxu1 %v922_v1 }
 0x1e8   :  { %793 = vmatpush3.bf16.msra.mxu1 %v1008_v7 }
 0x1e9   :  { %810 = vmatprep.subr.bf16.mxu1 %v922_v1 }
 0x2ae   :  { %v284_v34 = vpop.f32.mrb[4].mxu1 }
 0x2af   :  { %v290_v35 = vadd.f32 %v284_v34, %v1037_v16  ;;  %v772_v36 = vpop.f32.mrb[5].mxu1 }
 0x2b0   :  { %v287_v37 = vpop.f32.mrb[6].mxu1 }
 0x2b1   :  { %862 = vtanh.f32 %v290_v35  ;;  %v773_v38 = vpop.f32.mrb[7].mxu1 }
 0x2bb   :  { %v863_v39 = vpop.eup %862 }
 0x2bc   :  { %292 = vst.msk [vmem:[#allocation2 + $0x8] sm:$0xf] %vm191_vm2, %v863_v39  ;;  %v293_v40 = vpack.c.bf16 %v863_v39, %v863_v39 }
 0x2be   :  { %783 = vmatmul.mubr.msk.bf16.vlgmr.msra.gmra.mrb[8].mxu0 %vm145_vm3, %v293_v40 }
 0x2bf   :  { %799 = vmatpush3.bf16.msra.mxu0 %v972_v0  ;;  %806 = vmatprep.mubr.msk.bf16.mxu0 %vm923_vm1, %v922_v1 }
 0x2c0   :  { %800 = vmatprep.subr.bf16.mxu0 %v922_v1 }
 0x2c3   :  { %801 = vmatpush3.bf16.msra.mxu0 %v978_v2 }
 0x2c4   :  { %802 = vmatprep.subr.bf16.mxu0 %v922_v1 }
 0x2c7   :  { %803 = vmatpush3.bf16.msra.mxu0 %v997_v6 }
 0x2c8   :  { %804 = vmatprep.subr.bf16.mxu0 %v922_v1 }
 0x2cb   :  { %805 = vmatpush3.bf16.msra.mxu0 %v1008_v7 }
 0x2cc   :  { %822 = vmatprep.subr.bf16.mxu0 %v922_v1 }
 0x391   :  { %v331_v41 = vpop.f32.mrb[8].mxu0 }
 0x392   :  { %v338_v42 = vrot.slane %v331_v41, 4  ;;  %v784_v43 = vpop.f32.mrb[9].mxu0 }
 0x393   :  { %v334_v44 = vpop.f32.mrb[10].mxu0 }
 0x394   :  { %v340_v45 = vadd.f32 %v338_v42, %v1037_v16  ;;  %v785_v46 = vpop.f32.mrb[11].mxu0 }
 0x396   :  { %864 = vtanh.f32 %v340_v45 }
 0x3a0   :  { %v865_v47 = vpop.eup %864 }
 0x3a1   :  { %342 = vst.msk [vmem:[#allocation2 + $0x8] sm:$0xf0] %vm242_vm4, %v865_v47  ;;  %v343_v48 = vpack.c.bf16 %v865_v47, %v865_v47 }
 0x3a3   :  { %v345_v49 = vrot.slane %v343_v48, 2 }
 0x3a5   :  { %795 = vmatmul.mubr.msk.bf16.vlgmr.msra.gmra.mrb[8].mxu1 %vm145_vm3, %v345_v49 }
 0x3a6   :  { %811 = vmatpush3.bf16.msra.mxu1 %v972_v0  ;;  %818 = vmatprep.mubr.msk.bf16.mxu1 %vm923_vm1, %v922_v1 }
 0x3a7   :  { %812 = vmatprep.subr.bf16.mxu1 %v922_v1 }
 0x3aa   :  { %813 = vmatpush3.bf16.msra.mxu1 %v978_v2 }
 0x3ab   :  { %814 = vmatprep.subr.bf16.mxu1 %v922_v1 }
 0x3ae   :  { %815 = vmatpush3.bf16.msra.mxu1 %v997_v6 }
 0x3af   :  { %816 = vmatprep.subr.bf16.mxu1 %v922_v1 }
 0x3b2   :  { %817 = vmatpush3.bf16.msra.mxu1 %v1008_v7 }
 0x3b3   :  { %834 = vmatprep.subr.bf16.mxu1 %v856_v12 }
 0x478   :  { %v383_v50 = vpop.f32.mrb[8].mxu1 }
 0x479   :  { %v389_v51 = vadd.f32 %v383_v50, %v1033_v11  ;;  %v796_v52 = vpop.f32.mrb[9].mxu1 }
 0x47a   :  { %v386_v53 = vpop.f32.mrb[10].mxu1 }
 0x47b   :  { %866 = vtanh.f32 %v389_v51  ;;  %v797_v54 = vpop.f32.mrb[11].mxu1 }
 0x485   :  { %v867_v55 = vpop.eup %866 }
 0x486   :  { %391 = vst.msk [vmem:[#allocation2 + $0x10] sm:$0xf] %vm191_vm2, %v867_v55  ;;  %v392_v56 = vpack.c.bf16 %v867_v55, %v867_v55 }
 0x488   :  { %807 = vmatmul.mubr.msk.bf16.vlgmr.msra.gmra.mrb[12].mxu0 %vm145_vm3, %v392_v56 }
 0x489   :  { %823 = vmatpush3.bf16.msra.mxu0 %v972_v0  ;;  %830 = vmatprep.mubr.msk.bf16.mxu0 %vm923_vm1, %v922_v1 }
 0x48a   :  { %824 = vmatprep.subr.bf16.mxu0 %v922_v1 }
 0x48d   :  { %825 = vmatpush3.bf16.msra.mxu0 %v978_v2  ;;  %v542_v2 = vld [vmem:[#allocation2 + $0x8] sm:$0xff] }
 0x48e   :  { %826 = vmatprep.subr.bf16.mxu0 %v922_v1  ;;  %v545_v5 = vpack.c.bf16 %v542_v2, %v541_v4 }
 0x491   :  { %827 = vmatpush3.bf16.msra.mxu0 %v997_v6 }
 0x492   :  { %828 = vmatprep.subr.bf16.mxu0 %v922_v1 }
 0x495   :  { %829 = vmatpush3.bf16.msra.mxu0 %v1008_v7 }
 0x55b   :  { %v430_v57 = vpop.f32.mrb[12].mxu0 }
 0x55c   :  { %v437_v58 = vrot.slane %v430_v57, 4  ;;  %v808_v59 = vpop.f32.mrb[13].mxu0 }
 0x55d   :  { %v433_v60 = vpop.f32.mrb[14].mxu0 }
 0x55e   :  { %v439_v61 = vadd.f32 %v437_v58, %v1033_v11  ;;  %v809_v62 = vpop.f32.mrb[15].mxu0 }
 0x560   :  { %868 = vtanh.f32 %v439_v61 }
 0x56a   :  { %v869_v63 = vpop.eup %868 }
 0x56b   :  { %441 = vst.msk [vmem:[#allocation2 + $0x10] sm:$0xf0] %vm242_vm4, %v869_v63  ;;  %v442_v0 = vpack.c.bf16 %v869_v63, %v869_v63 }
 0x56d   :  { %v444_v3 = vrot.slane %v442_v0, 2 }
 0x56f   :  { %819 = vmatmul.mubr.msk.bf16.vlgmr.msra.gmra.mrb[12].mxu1 %vm145_vm3, %v444_v3 }
 0x570   :  { %838 = vmatprep.mubr.msk.bf16.mxu1 %vm570_vm5, %v545_v5  ;;  %835 = vmatpush3.bf16.msra.mxu1 %v856_v12 }
 0x571   :  { %836 = vmatprep.subr.bf16.mxu1 %v857_v13 }
 0x572   :  { %v543_v22 = vld [vmem:[#allocation2 + $0x10] sm:$0xff] }
 0x574   :  { %837 = vmatpush3.bf16.msra.mxu1 %v857_v13 }
 0x642   :  { %v482_v1 = vpop.f32.mrb[12].mxu1 }
 0x643   :  { %v488_v6 = vadd.f32 %v482_v1, %v1035_v14  ;;  %v820_v7 = vpop.f32.mrb[13].mxu1 }
 0x644   :  { %v485_v8 = vpop.f32.mrb[14].mxu1 }
 0x645   :  { %870 = vtanh.f32 %v488_v6  ;;  %v821_v9 = vpop.f32.mrb[15].mxu1 }
 0x64f   :  { %v871_v10 = vpop.eup %870 }
 0x650   :  { %490 = vst.msk [vmem:[#allocation2 + $0x18] sm:$0xf] %vm191_vm2, %v871_v10  ;;  %v491_v11 = vpack.c.bf16 %v871_v10, %v871_v10 }
 0x652   :  { %831 = vmatmul.mubr.msk.bf16.vlgmr.msra.gmra.mrb[16].mxu0 %vm145_vm3, %v491_v11 }
 0x725   :  { %v529_v15 = vpop.f32.mrb[16].mxu0 }
 0x726   :  { %v536_v16 = vrot.slane %v529_v15, 4  ;;  %v832_v17 = vpop.f32.mrb[17].mxu0 }
 0x727   :  { %v532_v18 = vpop.f32.mrb[18].mxu0 }
 0x728   :  { %v538_v19 = vadd.f32 %v536_v16, %v1035_v14  ;;  %v833_v20 = vpop.f32.mrb[19].mxu0 }
 0x72a   :  { %872 = vtanh.f32 %v538_v19 }
 0x734   :  { %v873_v21 = vpop.eup %872 }
 0x735   :  { %540 = vst.msk [vmem:[#allocation2 + $0x18] sm:$0xf0] %vm242_vm4, %v873_v21 }
 0x73c   :  { %v544_v23 = vld [vmem:[#allocation2 + $0x18] sm:$0xff] }
 0x73d   :  { %v546_v24 = vpack.c.bf16 %v544_v23, %v543_v22 }
 0x73f   :  { %839 = vmatmul.mubr.msk.bf16.vlgmr.msra.gmra.mrb[16].mxu1 %vm570_vm5, %v546_v24 }
 0x740   :  { %885 = shalt.err (!%p882_p4)
}
 0x741   :  { %s886_s21 = scalar_lea.hbm %s1155_s6, 512 }
 0x742   :  { %p887_p5 = scmp.ne.s32.totalorder %s1155_s6, %s886_s21  ;;  %p890_p6 = scmp.lt.u32.totalorder %s886_s21, %s1155_s6 }
 0x744   :  { %p892_p7 = pnand %p890_p6, %p887_p5 }
 0x746   :  { %895 = shalt.err (!%p892_p7)
}
 0x747   :  { %s926_s26 = smov 128   ;;  %s927_s27 = smov 8   ;;  %v680_v14 = vld [vmem:[%s1154_s5] ss:$0 sm:$0xff]  ;;  %vm626_vm6 = vcmask 64512  }
 0x748   :  { %642 = dma.vmem_to_hbm [thread:$0]  %s637_s17, 512, %s1155_s6, [#allocation3], %s926_s26, %s926_s26, %s927_s27  }
 0x749   :  { %s928_s9 = smov [#allocation4]  }
 0x74a   :  { %s648_s10 = sshll.u32 %s928_s9, 4  ;;  %s649_s10 = int_to_ptr.vmem [resolvable:$true] %s648_s10 }
 0x74b   :  { %s896_s6 = scalar_lea.vmem %s649_s10, 512  ;;  %p901_p9 = scmp.lt.s32.totalorder %s649_s10, %s649_s10 }
 0x74c   :  { %p897_p8 = scmp.ne.s32.totalorder %s649_s10, %s896_s6  ;;  %p902_p10 = scmp.lt.s32.totalorder %s896_s6, %s896_s6 }
 0x74e   :  { %p903_p11 = por %p902_p10, %p901_p9 }
 0x750   :  { %p904_p12 = pnand %p903_p11, %p897_p8 }
 0x812   :  { %v840_v25 = vpop.f32.mrb[16].mxu1 }
 0x813   :  { %v620_v26 = vadd.f32 %v840_v25, %v680_v14  ;;  %v611_v27 = vpop.f32.mrb[17].mxu1 }
 0x814   :  { %v612_v28 = vadd.f32 %v680_v14, %v611_v27  ;;  %v841_v29 = vpop.f32.mrb[18].mxu1 }
 0x815   :  { %629 = vst.msk [vmem:[#allocation4 + $0x10] sm:$0xff] %vm626_vm6, %v620_v26  ;;  %v623_v30 = vadd.f32 %v841_v29, %v680_v14  ;;  %v614_v31 = vpop.f32.mrb[19].mxu1 }
 0x816   :  { %627 = vst.msk [vmem:[#allocation4] sm:$0xff] %vm626_vm6, %v612_v28  ;;  %v615_v32 = vadd.f32 %v680_v14, %v614_v31 }
 0x817   :  { %630 = vst.msk [vmem:[#allocation4 + $0x18] sm:$0xff] %vm626_vm6, %v623_v30 }
 0x818   :  { %628 = vst.msk [vmem:[#allocation4 + $0x8] sm:$0xff] %vm626_vm6, %v615_v32 }
 0x819   :  { %907 = shalt.err (!%p904_p12)
}
 0x81a   :  { %s908_s11 = scalar_lea.hbm %s1156_s7, 512 }
 0x81b   :  { %p909_p13 = scmp.ne.s32.totalorder %s1156_s7, %s908_s11  ;;  %p912_p0 = scmp.lt.u32.totalorder %s908_s11, %s1156_s7 }
 0x81d   :  { %p914_p1 = pnand %p912_p0, %p909_p13 }
 0x81f   :  { %917 = shalt.err (!%p914_p1)
}
 0x820   :  { %654 = dma.vmem_to_hbm [thread:$0]  %s649_s10, 512, %s1156_s7, [#allocation5], %s926_s26, %s926_s26, %s927_s27  }
 0x821   :  { %918 = dma.done.wait [#allocation3], 512  }
 0x822   :  { %919 = vsyncadd [#allocation3], 4294966784 }
 0x823   :  { %920 = dma.done.wait [#allocation5], 512  }
 0x824   :  { %921 = vsyncadd [#allocation5], 4294966784 }
 0x825   :  { %661 = vsyncpa [#allocation3], 1 }
 0x826   :  { %662 = vsyncpa [#allocation5], 1 }

</bundles_post_ra>
